<compile_context>
chip_gen: v5e
topology: v5e:2x2
jax: 0.10.0
libtpu: 0.0.40
codegen_flags: <defaults>
</compile_context>

<pallas_src>
import jax
import jax.numpy as jnp
from jax import lax
from jax.experimental import pallas as pl
from jax.experimental.pallas import tpu as pltpu

BN_EPS = 1e-5
LANE = 128          # lane-pad hidden / action dims to this width
NEG_BIG = -1e30     # bias for padded logit lanes -> softmax prob ~ 0


def actor_kernel(x_ref, w1_ref, b1_ref, w2_ref, b2_ref, w3_ref, b3_ref, out_ref):
    """Fused (BN-folded) Linear+ReLU -> Linear+ReLU -> Linear -> Softmax on one batch tile."""
    x = x_ref[...]                                                    # (TB, S) f32

    h1 = jnp.dot(x, w1_ref[...], preferred_element_type=jnp.float32) + b1_ref[...]
    h1 = jnp.maximum(h1, 0.0)                                         # (TB, 128)
    h2 = jnp.dot(h1, w2_ref[...], preferred_element_type=jnp.float32) + b2_ref[...]
    h2 = jnp.maximum(h2, 0.0)                                         # (TB, 128)

    logits = jnp.dot(h2, w3_ref[...], preferred_element_type=jnp.float32) + b3_ref[...]
    m = jnp.max(logits, axis=-1, keepdims=True)
    e = jnp.exp(logits - m)                                           # padded lanes -> exp(-1e30)=0
    d = jnp.sum(e, axis=-1, keepdims=True)
    r = pl.reciprocal(d, approx=True)                                 # EUP slot
    r = r * (2.0 - d * r)                                             # one Newton step (tiny, (TB,1))
    out_ref[...] = (e * r).astype(out_ref.dtype)


def ros_reinforce_actor_forward(states, params, *, tile_b=64):
    """states: (B, state_dim) float32. Returns softmax action probs (B, action_dim).

    tile_b: batch tile (multiple of 8).  Sized for VMEM headroom on all chips at
    these feature widths; scale it up (and raise vmem_limit_bytes) for v5e/v6e,
    keep it ~half as large on v7x (64 MiB VMEM).
    """
    B, S = states.shape
    H = params["w1"].shape[1]
    A = params["w3"].shape[1]
    assert H <= LANE and A <= LANE

    x = states.astype(jnp.float32)

    # --- BatchNorm1d training-mode statistics over the FULL batch (hoisted) ---
    mean = jnp.mean(x, axis=0, keepdims=True)                          # (1, S)
    var = jnp.mean(jnp.square(x - mean), axis=0, keepdims=True)        # biased
    scale = params["gamma"] * lax.rsqrt(var + BN_EPS)                  # (1, S)
    shift = params["beta"] - mean * scale                              # (1, S)
    # Fold BN affine into the first Linear: relu(x*scale+shift @ w1 + b1)
    #   == relu(x @ (diag(scale) @ w1) + (shift @ w1 + b1))
    w1_eff = params["w1"] * scale.reshape(S, 1)                        # (S, H)
    b1_eff = params["b1"] + shift @ params["w1"]                       # (1, H)

    # --- Lane-pad hidden/action dims to 128 ---
    w1p = jnp.zeros((S, LANE), jnp.float32).at[:, :H].set(w1_eff)
    b1p = jnp.zeros((1, LANE), jnp.float32).at[:, :H].set(b1_eff)
    w2p = jnp.zeros((LANE, LANE), jnp.float32).at[:H, :H].set(params["w2"])
    b2p = jnp.zeros((1, LANE), jnp.float32).at[:, :H].set(params["b2"])
    w3p = jnp.zeros((LANE, LANE), jnp.float32).at[:H, :A].set(params["w3"])
    b3p = jnp.full((1, LANE), NEG_BIG, jnp.float32).at[:, :A].set(params["b3"])

    # --- Pad batch to a multiple of the tile ---
    n_tiles = pl.cdiv(B, tile_b)
    b_pad = n_tiles * tile_b
    x_in = x if b_pad == B else jnp.zeros((b_pad, S), jnp.float32).at[:B].set(x)

    def full(shape):
        return pl.BlockSpec(shape, lambda i: (0, 0))

    out = pl.pallas_call(
        actor_kernel,
        out_shape=jax.ShapeDtypeStruct((b_pad, LANE), jnp.float32),
        grid=(n_tiles,),
        in_specs=[
            pl.BlockSpec((tile_b, S), lambda i: (i, 0)),   # batch-tiled input
            full((S, LANE)), full((1, LANE)),              # w1, b1 (resident)
            full((LANE, LANE)), full((1, LANE)),           # w2, b2
            full((LANE, LANE)), full((1, LANE)),           # w3, b3
        ],
        out_specs=pl.BlockSpec((tile_b, LANE), lambda i: (i, 0)),  # lane-dense store
        compiler_params=pltpu.CompilerParams(
            dimension_semantics=("parallel",)),
    )(x_in, w1p, b1p, w2p, b2p, w3p, b3p)

    return out[:B, :A]


def init_params(key, state_dim, hidden_dim, action_dim):
    """Deterministic parameter init (PyTorch-style uniform fan-in bounds)."""
    ks = jax.random.split(key, 6)

    def linear(kw, kb, fan_in, fan_out):
        bound = 1.0 / jnp.sqrt(jnp.float32(fan_in))
        # Stored as (in, out) so the kernel computes x @ W + b.
        w = jax.random.uniform(kw, (fan_in, fan_out), jnp.float32, -bound, bound)
        b = jax.random.uniform(kb, (1, fan_out), jnp.float32, -bound, bound)
        return w, b

    w1, b1 = linear(ks[0], ks[1], state_dim, hidden_dim)
    w2, b2 = linear(ks[2], ks[3], hidden_dim, hidden_dim)
    w3, b3 = linear(ks[4], ks[5], hidden_dim, action_dim)
    return dict(
        gamma=jnp.ones((1, state_dim), jnp.float32),   # BatchNorm1d affine weight
        beta=jnp.zeros((1, state_dim), jnp.float32),   # BatchNorm1d affine bias
        w1=w1, b1=b1, w2=w2, b2=b2, w3=w3, b3=b3,
    )


def reference_forward(states, p):
    x = states.astype(jnp.float32)
    mean = jnp.mean(x, axis=0, keepdims=True)
    var = jnp.mean((x - mean) ** 2, axis=0, keepdims=True)
    xn = (x - mean) / jnp.sqrt(var + BN_EPS) * p["gamma"] + p["beta"]
    h1 = jnp.maximum(xn @ p["w1"] + p["b1"], 0.0)
    h2 = jnp.maximum(h1 @ p["w2"] + p["b2"], 0.0)
    logits = h2 @ p["w3"] + p["b3"]
    return jax.nn.softmax(logits, axis=-1)


if __name__ == "__main__":
    B, STATE_DIM, HIDDEN_DIM, ACTION_DIM = 200, 16, 64, 4   # B not a tile multiple on purpose

    key = jax.random.PRNGKey(0)
    k_x, k_p = jax.random.split(key)
    states = jax.random.normal(k_x, (B, STATE_DIM), jnp.float32)
    params = init_params(k_p, STATE_DIM, HIDDEN_DIM, ACTION_DIM)

    out = ros_reinforce_actor_forward(states, params, tile_b=64)
    out = jax.block_until_ready(out)

    ref = reference_forward(states, params)
    assert out.shape == (B, ACTION_DIM)
    assert jnp.allclose(out, ref, atol=1e-4, rtol=1e-4)
    assert jnp.allclose(jnp.sum(out, axis=-1), 1.0, atol=1e-5)

    print("KERNEL_OK")
</pallas_src>

<mosaic_0001>
module attributes {stable_mosaic.version = 11 : i64} {
  func.func @actor_kernel(%arg0: i32, %arg1: memref<64x16xf32, #tpu.memory_space<vmem>>, %arg2: memref<16x128xf32, #tpu.memory_space<vmem>>, %arg3: memref<1x128xf32, #tpu.memory_space<vmem>>, %arg4: memref<128x128xf32, #tpu.memory_space<vmem>>, %arg5: memref<1x128xf32, #tpu.memory_space<vmem>>, %arg6: memref<128x128xf32, #tpu.memory_space<vmem>>, %arg7: memref<1x128xf32, #tpu.memory_space<vmem>>, %arg8: memref<64x128xf32, #tpu.memory_space<vmem>>) attributes {dimension_semantics = [#tpu.dimension_semantics<parallel>], iteration_bounds = array<i64: 4>, scalar_prefetch = 0 : i64, scratch_operands = 0 : i64, tpu.core_type = #tpu.core_type<tc>, window_params = [{transform_indices = @transform_0, window_bounds = array<i64: 64, 16>}, {pipeline_mode = #tpu.pipeline_mode<synchronous>, transform_indices = @transform_1, window_bounds = array<i64: 16, 128>}, {pipeline_mode = #tpu.pipeline_mode<synchronous>, transform_indices = @transform_2, window_bounds = array<i64: 1, 128>}, {pipeline_mode = #tpu.pipeline_mode<synchronous>, transform_indices = @transform_3, window_bounds = array<i64: 128, 128>}, {pipeline_mode = #tpu.pipeline_mode<synchronous>, transform_indices = @transform_4, window_bounds = array<i64: 1, 128>}, {pipeline_mode = #tpu.pipeline_mode<synchronous>, transform_indices = @transform_5, window_bounds = array<i64: 128, 128>}, {pipeline_mode = #tpu.pipeline_mode<synchronous>, transform_indices = @transform_6, window_bounds = array<i64: 1, 128>}, {transform_indices = @transform_7, window_bounds = array<i64: 64, 128>}]} {
    %c0 = arith.constant 0 : index
    %c0_0 = arith.constant 0 : index
    %0 = vector.load %arg1[%c0, %c0_0] : memref<64x16xf32, #tpu.memory_space<vmem>>, vector<64x16xf32>
    %c0_1 = arith.constant 0 : index
    %c0_2 = arith.constant 0 : index
    %1 = vector.load %arg2[%c0_1, %c0_2] : memref<16x128xf32, #tpu.memory_space<vmem>>, vector<16x128xf32>
    %cst = arith.constant dense<0.000000e+00> : vector<64x128xf32>
    %2 = tpu.matmul %0, %1, %cst {dimension_numbers = #tpu.dot_dimension_numbers<[1], [0], [0], [1], [0, 0, 1, 1], [], []>} : vector<64x16xf32>, vector<16x128xf32>, vector<64x128xf32> -> vector<64x128xf32>
    %c0_3 = arith.constant 0 : index
    %c0_4 = arith.constant 0 : index
    %3 = vector.load %arg3[%c0_3, %c0_4] : memref<1x128xf32, #tpu.memory_space<vmem>>, vector<1x128xf32>
    %4 = vector.broadcast %3 : vector<1x128xf32> to vector<64x128xf32>
    %5 = arith.addf %2, %4 : vector<64x128xf32>
    %cst_5 = arith.constant 0.000000e+00 : f32
    %6 = vector.broadcast %cst_5 : f32 to vector<64x128xf32>
    %7 = arith.maximumf %5, %6 : vector<64x128xf32>
    %c0_6 = arith.constant 0 : index
    %c0_7 = arith.constant 0 : index
    %8 = vector.load %arg4[%c0_6, %c0_7] : memref<128x128xf32, #tpu.memory_space<vmem>>, vector<128x128xf32>
    %cst_8 = arith.constant dense<0.000000e+00> : vector<64x128xf32>
    %9 = tpu.matmul %7, %8, %cst_8 {dimension_numbers = #tpu.dot_dimension_numbers<[1], [0], [0], [1], [0, 0, 1, 1], [], []>} : vector<64x128xf32>, vector<128x128xf32>, vector<64x128xf32> -> vector<64x128xf32>
    %c0_9 = arith.constant 0 : index
    %c0_10 = arith.constant 0 : index
    %10 = vector.load %arg5[%c0_9, %c0_10] : memref<1x128xf32, #tpu.memory_space<vmem>>, vector<1x128xf32>
    %11 = vector.broadcast %10 : vector<1x128xf32> to vector<64x128xf32>
    %12 = arith.addf %9, %11 : vector<64x128xf32>
    %cst_11 = arith.constant 0.000000e+00 : f32
    %13 = vector.broadcast %cst_11 : f32 to vector<64x128xf32>
    %14 = arith.maximumf %12, %13 : vector<64x128xf32>
    %c0_12 = arith.constant 0 : index
    %c0_13 = arith.constant 0 : index
    %15 = vector.load %arg6[%c0_12, %c0_13] : memref<128x128xf32, #tpu.memory_space<vmem>>, vector<128x128xf32>
    %cst_14 = arith.constant dense<0.000000e+00> : vector<64x128xf32>
    %16 = tpu.matmul %14, %15, %cst_14 {dimension_numbers = #tpu.dot_dimension_numbers<[1], [0], [0], [1], [0, 0, 1, 1], [], []>} : vector<64x128xf32>, vector<128x128xf32>, vector<64x128xf32> -> vector<64x128xf32>
    %c0_15 = arith.constant 0 : index
    %c0_16 = arith.constant 0 : index
    %17 = vector.load %arg7[%c0_15, %c0_16] : memref<1x128xf32, #tpu.memory_space<vmem>>, vector<1x128xf32>
    %18 = vector.broadcast %17 : vector<1x128xf32> to vector<64x128xf32>
    %19 = arith.addf %16, %18 : vector<64x128xf32>
    %cst_17 = arith.constant dense<0xFF800000> : vector<64xf32>
    %20 = vector.multi_reduction <maximumf>, %19, %cst_17 [1] : vector<64x128xf32> to vector<64xf32>
    %21 = vector.shape_cast %20 : vector<64xf32> to vector<64x1xf32>
    %22 = vector.broadcast %21 : vector<64x1xf32> to vector<64x128xf32>
    %23 = arith.subf %19, %22 : vector<64x128xf32>
    %24 = math.exp %23 : vector<64x128xf32>
    %cst_18 = arith.constant dense<0.000000e+00> : vector<64xf32>
    %25 = vector.multi_reduction <add>, %24, %cst_18 [1] : vector<64x128xf32> to vector<64xf32>
    %26 = vector.shape_cast %25 : vector<64xf32> to vector<64x1xf32>
    %27 = tpu.reciprocal %26 {approx = true} : vector<64x1xf32> -> vector<64x1xf32>
    %28 = arith.mulf %26, %27 : vector<64x1xf32>
    %cst_19 = arith.constant 2.000000e+00 : f32
    %29 = vector.broadcast %cst_19 : f32 to vector<64x1xf32>
    %30 = arith.subf %29, %28 : vector<64x1xf32>
    %31 = arith.mulf %27, %30 : vector<64x1xf32>
    %32 = vector.broadcast %31 : vector<64x1xf32> to vector<64x128xf32>
    %33 = arith.mulf %24, %32 : vector<64x128xf32>
    %c0_20 = arith.constant 0 : index
    %c0_21 = arith.constant 0 : index
    %34 = vector.load %arg8[%c0_20, %c0_21] : memref<64x128xf32, #tpu.memory_space<vmem>>, vector<64x128xf32>
    tpu.vector_store %arg8[%c0_20, %c0_21], %33 {strides = array<i32>} : memref<64x128xf32, #tpu.memory_space<vmem>>, vector<64x128xf32>,
    return
  }
  func.func @transform_0(%arg0: i32) -> (i32, i32) {
    %c0_i32 = arith.constant 0 : i32
    %c0_i32_0 = arith.constant 0 : i32
    return %arg0, %c0_i32 : i32, i32
  }
  func.func @transform_1(%arg0: i32) -> (i32, i32) {
    %c0_i32 = arith.constant 0 : i32
    %c0_i32_0 = arith.constant 0 : i32
    %c0_i32_1 = arith.constant 0 : i32
    return %c0_i32, %c0_i32_0 : i32, i32
  }
  func.func @transform_2(%arg0: i32) -> (i32, i32) {
    %c0_i32 = arith.constant 0 : i32
    %c0_i32_0 = arith.constant 0 : i32
    %c0_i32_1 = arith.constant 0 : i32
    return %c0_i32, %c0_i32_0 : i32, i32
  }
  func.func @transform_3(%arg0: i32) -> (i32, i32) {
    %c0_i32 = arith.constant 0 : i32
    %c0_i32_0 = arith.constant 0 : i32
    %c0_i32_1 = arith.constant 0 : i32
    return %c0_i32, %c0_i32_0 : i32, i32
  }
  func.func @transform_4(%arg0: i32) -> (i32, i32) {
    %c0_i32 = arith.constant 0 : i32
    %c0_i32_0 = arith.constant 0 : i32
    %c0_i32_1 = arith.constant 0 : i32
    return %c0_i32, %c0_i32_0 : i32, i32
  }
  func.func @transform_5(%arg0: i32) -> (i32, i32) {
    %c0_i32 = arith.constant 0 : i32
    %c0_i32_0 = arith.constant 0 : i32
    %c0_i32_1 = arith.constant 0 : i32
    return %c0_i32, %c0_i32_0 : i32, i32
  }
  func.func @transform_6(%arg0: i32) -> (i32, i32) {
    %c0_i32 = arith.constant 0 : i32
    %c0_i32_0 = arith.constant 0 : i32
    %c0_i32_1 = arith.constant 0 : i32
    return %c0_i32, %c0_i32_0 : i32, i32
  }
  func.func @transform_7(%arg0: i32) -> (i32, i32) {
    %c0_i32 = arith.constant 0 : i32
    %c0_i32_0 = arith.constant 0 : i32
    return %arg0, %c0_i32 : i32, i32
  }
}

</mosaic_0001>

<bundles_post_ra>
// kernel: tpu_custom_call.1
= control target key start
LH: loop header
LB: loop body
LE: loop exit
PB: predicated region body
PF: predicated region fallthrough
CT: control target
= control target key end

     0   :  { %12 = vsyncpa [#allocation3], 0  ;;  %s1165_s0 = inlined_call_operand.vmem [shape: f32[256,16], index: 0, kind: input, shape index: {}]   ;;  %s1166_s1 = inlined_call_operand.vmem [shape: f32[16,128], index: 1, kind: input, shape index: {}]   ;;  %s1167_s2 = inlined_call_operand.vmem [shape: f32[1,128], index: 2, kind: input, shape index: {}]   ;;  %s1168_s3 = inlined_call_operand.vmem [shape: f32[128,128], index: 3, kind: input, shape index: {}]   ;;  %s1169_s4 = inlined_call_operand.vmem [shape: f32[1,128], index: 4, kind: input, shape index: {}]   ;;  %s1170_s5 = inlined_call_operand.vmem [shape: f32[128,128], index: 5, kind: input, shape index: {}]   ;;  %s1171_s6 = inlined_call_operand.vmem [shape: f32[1,128], index: 6, kind: input, shape index: {}]   ;;  %s1172_s7 = inlined_call_operand.hbm [shape: f32[256,128], index: 7, kind: output, shape index: {}]  }
   0x1   :  { %14 = vsyncpa [#allocation3 + $0x1], 0  ;;  %s915_s24 = smov 0   ;;  %s917_s25 = smov 0  }
   0x2   :  { %s919_s26 = smov 0   ;;  %s921_s27 = smov 0  }
   0x3 LB: > { %s936_s28 = sadd.s32 4294967295, %s871_s27   ;;  %s680_s29 = sadd.s32 4294967294, %s871_s27   ;;  %s871_s27 = sphi %s921_s27, %s1178_s27   ;;  %s867_s26 = sphi %s919_s26, %s1177_s26   ;;  %s863_s25 = sphi %s917_s25, %s1176_s25   ;;  %s859_s24 = sphi %s915_s24, %s1175_s24  }
   0x4   : > { %s940_s30 = sadd.s32 1, %s871_s27   ;;  %s179_s8 = sadd.s32 1, %s867_s26 }
   0x5   : > { %s176_s9 = ssub.s32 %s871_s27, %s940_s30  ;;  %p189_p0 = scmp.ne.s32.totalorder %s867_s26, %s863_s25 }
   0x6   : > { %p177_p1 = scmp.eq.s32.totalorder %s176_s9, 0  ;;  %p190_p2 = scmp.eq.s32.totalorder %s936_s28, 3 }
   0x7   : > { %p195_p3 = scmp.ne.s32.totalorder %s863_s25, %s859_s24  ;;  %p196_p4 = scmp.eq.s32.totalorder %s680_s29, 3 }
   0x8   : > { %s951_s10 = scalar_select %p177_p1, %s867_s26, %s179_s8  }
   0x9   : > { %p953_p5 = por %p190_p2, %p189_p0  ;;  %p957_p6 = por %p196_p4, %p195_p3 }
   0xa   : > { %p683_p7 = scmp.ge.s32.totalorder %s871_s27, 1  ;;  %p241_p8 = scmp.lt.s32.totalorder %s871_s27, 5 }
   0xc   : > { %p242_p9 = pnand %p683_p7, %p241_p8 }
   0xd   : > { %s685_s17 = sshll.u32 (!%p242_p9), %s936_s28, 3  ;;  %s270_s29 = sand.u32 (!%p242_p9), 1, %s863_s25  }
   0xe   : > { %245 = sbr.rel (%p242_p9) target bundleno = 741 (0x2e5), region = 48  ;;  %p274_p10 = scmp.lt.s32.totalorder (!%p242_p9), %s685_s17, 31 }
   0xf   : > { %s684_s8 = sshll.u32 (!%p242_p9), %s270_s29, 6  ;;  %s700_s13 = sshll.u32 (!%p242_p9), %s936_s28, 6 }
  0x10   : > { %s1118_s9 = scalar_lea.vmem (!%p242_p9), [#allocation2], %s684_s8  ;;  %s614_s15 = scalar_lea.hbm (!%p242_p9), %s1172_s7, %s700_s13 }
  0x11   : > { %s615_s16 = sshll.u32 (!%p242_p9), %s1118_s9, 4  ;;  %s603_s28 = scalar_lea.sflag (!%p242_p9), [#allocation3], %s270_s29  ;;  %s616_s16 = int_to_ptr.vmem [resolvable:$true] %s615_s16 }
  0x12   : > { %s829_s23 = scalar_lea.hbm (!%p242_p9), %s1172_s7, 256 }
  0x13   : > { %v289_v0 = vld [vmem:[%s1166_s1 + $0x8] sm:$0xff]  ;;  %v288_v1 = vld [vmem:[%s1166_s1] sm:$0xff]  ;;  %s1180_s17 = smov (!%p274_p10, %s685_s17), 31  ;;  %vm294_vm0 = vcmask 130048   ;;  %v383_v6 = vld [vmem:[%s1168_s3 + $0x78] sm:$0xff] }
  0x14   : > { %333 = vmatpush.msra.mxu0 %v289_v0  ;;  %s686_s18 = sshll.u32 %s1180_s17, 3  ;;  %v382_v7 = vld [vmem:[%s1168_s3 + $0x70] sm:$0xff]  ;;  %388 = vmatpush.msra.mxu1 %v383_v6  ;;  %v381_v8 = vld [vmem:[%s1168_s3 + $0x68] sm:$0xff]  ;;  %v380_v9 = vld [vmem:[%s1168_s3 + $0x60] sm:$0xff]  ;;  %s617_s17 = sshll.u32 %s614_s15, 4  ;;  %s618_s17 = int_to_ptr.hbm [resolvable:$true] %s617_s17 }
  0x15   : > { %s973_s21 = scalar_lea.vmem %s1165_s0, %s686_s18  ;;  %701 = vmatpush.msra.mxu3 %v383_v6  ;;  %v379_v11 = vld [vmem:[%s1168_s3 + $0x58] sm:$0xff]  ;;  %v378_v12 = vld [vmem:[%s1168_s3 + $0x50] sm:$0xff]  ;;  %v377_v13 = vld [vmem:[%s1168_s3 + $0x48] sm:$0xff]  ;;  %s823_s18 = sshra.s32 %s618_s17, 4  ;;  %s824_s18 = int_to_ptr.hbm [resolvable:$true] %s823_s18 }
  0x16   : > { %334 = vmatpush.msra.mxu0 %v288_v1  ;;  %v280_v2 = vld [vmem:[%s973_s21] sm:$0xff]  ;;  %v281_v3 = vld [vmem:[%s973_s21 + $0x8] sm:$0xff]  ;;  %v282_v4 = vld [vmem:[%s973_s21 + $0x10] sm:$0xff]  ;;  %389 = vmatpush.msra.mxu1 %v382_v7  ;;  %s825_s19 = scalar_lea.hbm %s824_s18, 64  ;;  %p830_p0 = scmp.lt.s32.totalorder %s824_s18, %s1172_s7 }
  0x17   : > { %687 = vmatmul.msk.f32.vlgmr.msra.gmra.mxu0 %vm294_vm0, %v280_v2  ;;  %v283_v5 = vld [vmem:[%s973_s21 + $0x18] sm:$0xff]  ;;  %702 = vmatpush.msra.mxu3 %v382_v7  ;;  %v284_v10 = vld [vmem:[%s973_s21 + $0x20] sm:$0xff]  ;;  %v285_v15 = vld [vmem:[%s973_s21 + $0x28] sm:$0xff]  ;;  %p826_p11 = scmp.ne.s32.totalorder %s824_s18, %s825_s19  ;;  %p831_p1 = scmp.lt.s32.totalorder %s829_s23, %s825_s19 }
  0x18   : > { %390 = vmatpush.msra.mxu1 %v381_v8  ;;  %v376_v14 = vld [vmem:[%s1168_s3 + $0x40] sm:$0xff]  ;;  %v375_v16 = vld [vmem:[%s1168_s3 + $0x38] sm:$0xff]  ;;  %v374_v17 = vld [vmem:[%s1168_s3 + $0x30] sm:$0xff] }
  0x19   : > { %703 = vmatpush.msra.mxu3 %v381_v8  ;;  %v373_v18 = vld [vmem:[%s1168_s3 + $0x28] sm:$0xff]  ;;  %v372_v19 = vld [vmem:[%s1168_s3 + $0x20] sm:$0xff]  ;;  %v286_v20 = vld [vmem:[%s973_s21 + $0x30] sm:$0xff]  ;;  %p827_p12 = pnand %p826_p11, %p953_p5  ;;  %p832_p2 = por %p831_p1, %p830_p0 }
  0x1a   : > { %391 = vmatpush.msra.mxu1 %v380_v9  ;;  %v371_v21 = vld [vmem:[%s1168_s3 + $0x18] sm:$0xff]  ;;  %v370_v23 = vld [vmem:[%s1168_s3 + $0x10] sm:$0xff]  ;;  %v369_v24 = vld [vmem:[%s1168_s3 + $0x8] sm:$0xff] }
  0x1b   : > { %704 = vmatpush.msra.mxu3 %v380_v9  ;;  %v287_v22 = vld [vmem:[%s973_s21 + $0x38] sm:$0xff]  ;;  %v368_v25 = vld [vmem:[%s1168_s3] sm:$0xff]  ;;  %v451_v40 = vld [vmem:[%s1170_s5 + $0x70] sm:$0xff]  ;;  %p828_p13 = pneg %p827_p12 }
  0x1c   : > { %392 = vmatpush.msra.mxu1 %v379_v11  ;;  %v1042_v26 = vld [vmem:[%s1167_s2] ss:$0 sm:$0xff]  ;;  %v452_v39 = vld [vmem:[%s1170_s5 + $0x78] sm:$0xff]  ;;  %v450_v41 = vld [vmem:[%s1170_s5 + $0x68] sm:$0xff] }
  0x1d   : > { %705 = vmatpush.msra.mxu3 %v379_v11  ;;  %457 = vmatpush.msra.mxu2 %v452_v39  ;;  %v449_v44 = vld [vmem:[%s1170_s5 + $0x60] sm:$0xff]  ;;  %v448_v46 = vld [vmem:[%s1170_s5 + $0x58] sm:$0xff]  ;;  %v447_v47 = vld [vmem:[%s1170_s5 + $0x50] sm:$0xff]  ;;  %p833_p3 = pnand %p832_p2, %p828_p13 }
  0x1e   : > { %393 = vmatpush.msra.mxu1 %v378_v12  ;;  %v446_v48 = vld [vmem:[%s1170_s5 + $0x48] sm:$0xff]  ;;  %v445_v51 = vld [vmem:[%s1170_s5 + $0x40] sm:$0xff]  ;;  %v444_v53 = vld [vmem:[%s1170_s5 + $0x38] sm:$0xff] }
  0x1f   : > { %688 = vmatmul.msk.f32.gmra.mxu0 %vm294_vm0, %v281_v3  ;;  %706 = vmatpush.msra.mxu3 %v378_v12  ;;  %v443_v54 = vld [vmem:[%s1170_s5 + $0x30] sm:$0xff]  ;;  %v442_v55 = vld [vmem:[%s1170_s5 + $0x28] sm:$0xff]  ;;  %v441_v58 = vld [vmem:[%s1170_s5 + $0x20] sm:$0xff] }
  0x20   : > { %394 = vmatpush.msra.mxu1 %v377_v13  ;;  %458 = vmatpush.msra.mxu2 %v451_v40  ;;  %v440_v60 = vld [vmem:[%s1170_s5 + $0x18] sm:$0xff]  ;;  %v439_v0 = vld [vmem:[%s1170_s5 + $0x10] sm:$0xff]  ;;  %v438_v1 = vld [vmem:[%s1170_s5 + $0x8] sm:$0xff] }
  0x21   : > { %707 = vmatpush.msra.mxu3 %v377_v13  ;;  %v437_v2 = vld [vmem:[%s1170_s5] sm:$0xff] }
  0x22   : > { %395 = vmatpush.msra.mxu1 %v376_v14  ;;  %459 = vmatpush.msra.mxu2 %v450_v41  ;;  %v775_v3 = vld [vmem:[%s1169_s4] ss:$0 sm:$0xff] }
  0x23   : > { %708 = vmatpush.msra.mxu3 %v376_v14 }
  0x24   : > { %396 = vmatpush.msra.mxu1 %v375_v16  ;;  %460 = vmatpush.msra.mxu2 %v449_v44 }
  0x25   : > { %709 = vmatpush.msra.mxu3 %v375_v16 }
  0x26   : > { %397 = vmatpush.msra.mxu1 %v374_v17  ;;  %461 = vmatpush.msra.mxu2 %v448_v46 }
  0x27   : > { %689 = vmatmul.msk.f32.gmra.mxu0 %vm294_vm0, %v282_v4  ;;  %710 = vmatpush.msra.mxu3 %v374_v17 }
  0x28   : > { %398 = vmatpush.msra.mxu1 %v373_v18  ;;  %462 = vmatpush.msra.mxu2 %v447_v47 }
  0x29   : > { %711 = vmatpush.msra.mxu3 %v373_v18 }
  0x2a   : > { %399 = vmatpush.msra.mxu1 %v372_v19  ;;  %463 = vmatpush.msra.mxu2 %v446_v48 }
  0x2b   : > { %712 = vmatpush.msra.mxu3 %v372_v19 }
  0x2c   : > { %400 = vmatpush.msra.mxu1 %v371_v21  ;;  %464 = vmatpush.msra.mxu2 %v445_v51 }
  0x2d   : > { %713 = vmatpush.msra.mxu3 %v371_v21 }
  0x2e   : > { %401 = vmatpush.msra.mxu1 %v370_v23  ;;  %465 = vmatpush.msra.mxu2 %v444_v53 }
  0x2f   : > { %690 = vmatmul.msk.f32.gmra.mxu0 %vm294_vm0, %v283_v5  ;;  %714 = vmatpush.msra.mxu3 %v370_v23 }
  0x30   : > { %402 = vmatpush.msra.mxu1 %v369_v24  ;;  %466 = vmatpush.msra.mxu2 %v443_v54 }
  0x31   : > { %715 = vmatpush.msra.mxu3 %v369_v24 }
  0x32   : > { %403 = vmatpush.msra.mxu1 %v368_v25  ;;  %467 = vmatpush.msra.mxu2 %v442_v55 }
  0x33   : > { %716 = vmatpush.msra.mxu3 %v368_v25 }
  0x34   : > { %468 = vmatpush.msra.mxu2 %v441_v58 }
  0x35   : > { %717 = vmatpush.msrb.mxu3 %v452_v39 }
  0x36   : > { %469 = vmatpush.msra.mxu2 %v440_v60 }
  0x37   : > { %691 = vmatmul.msk.f32.gmra.mxu0 %vm294_vm0, %v284_v10  ;;  %718 = vmatpush.msrb.mxu3 %v451_v40 }
  0x38   : > { %470 = vmatpush.msra.mxu2 %v439_v0 }
  0x39   : > { %719 = vmatpush.msrb.mxu3 %v450_v41 }
  0x3a   : > { %471 = vmatpush.msra.mxu2 %v438_v1 }
  0x3b   : > { %720 = vmatpush.msrb.mxu3 %v449_v44 }
  0x3c   : > { %472 = vmatpush.msra.mxu2 %v437_v2 }
  0x3d   : > { %721 = vmatpush.msrb.mxu3 %v448_v46 }
  0x3f   : > { %692 = vmatmul.msk.f32.gmra.mxu0 %vm294_vm0, %v285_v15  ;;  %722 = vmatpush.msrb.mxu3 %v447_v47 }
  0x41   : > { %723 = vmatpush.msrb.mxu3 %v446_v48 }
  0x43   : > { %724 = vmatpush.msrb.mxu3 %v445_v51 }
  0x45   : > { %725 = vmatpush.msrb.mxu3 %v444_v53 }
  0x47   : > { %693 = vmatmul.msk.f32.gmra.mxu0 %vm294_vm0, %v286_v20  ;;  %726 = vmatpush.msrb.mxu3 %v443_v54 }
  0x49   : > { %727 = vmatpush.msrb.mxu3 %v442_v55 }
  0x4b   : > { %728 = vmatpush.msrb.mxu3 %v441_v58 }
  0x4d   : > { %729 = vmatpush.msrb.mxu3 %v440_v60 }
  0x4f   : > { %694 = vmatmul.msk.f32.gmra.mxu0 %vm294_vm0, %v287_v22  ;;  %730 = vmatpush.msrb.mxu3 %v439_v0 }
  0x51   : > { %731 = vmatpush.msrb.mxu3 %v438_v1 }
  0x53   : > { %732 = vmatpush.msrb.mxu3 %v437_v2 }
  0x94   : > { %v336_v27 = vpop.f32.mrf.mxu0 }
  0x95   : > { %v337_v28 = vadd.f32 %v1042_v26, %v336_v27 }
  0x97   : > { %v360_v29 = vmax.f32 %v337_v28, 0.0  ;;  %v776_v28 = vld [vmem:[%s1171_s6] ss:$0 sm:$0xff] }
  0x99   : > { %404 = vmatmul.f32.vlgmr.msra.gmra.mxu1 %v360_v29 }
  0x9c   : > { %v339_v30 = vpop.f32.mrf.mxu0 }
  0x9d   : > { %v340_v31 = vadd.f32 %v1042_v26, %v339_v30 }
  0x9f   : > { %v361_v32 = vmax.f32 %v340_v31, 0.0 }
  0xa1   : > { %407 = vmatmul.f32.gmra.mxu1 %v361_v32 }
  0xa4   : > { %v342_v33 = vpop.f32.mrf.mxu0 }
  0xa5   : > { %v343_v34 = vadd.f32 %v1042_v26, %v342_v33 }
  0xa7   : > { %v362_v35 = vmax.f32 %v343_v34, 0.0 }
  0xa9   : > { %410 = vmatmul.f32.gmra.mxu1 %v362_v35 }
  0xac   : > { %v345_v36 = vpop.f32.mrf.mxu0 }
  0xad   : > { %v346_v37 = vadd.f32 %v1042_v26, %v345_v36 }
  0xaf   : > { %v363_v38 = vmax.f32 %v346_v37, 0.0 }
  0xb1   : > { %413 = vmatmul.f32.gmra.mxu1 %v363_v38 }
  0xb4   : > { %v348_v42 = vpop.f32.mrf.mxu0 }
  0xb5   : > { %v349_v43 = vadd.f32 %v1042_v26, %v348_v42 }
  0xb7   : > { %v364_v45 = vmax.f32 %v349_v43, 0.0 }
  0xb9   : > { %416 = vmatmul.f32.gmra.mxu1 %v364_v45 }
  0xbc   : > { %v351_v49 = vpop.f32.mrf.mxu0 }
  0xbd   : > { %v352_v50 = vadd.f32 %v1042_v26, %v351_v49 }
  0xbf   : > { %v365_v52 = vmax.f32 %v352_v50, 0.0 }
  0xc1   : > { %419 = vmatmul.f32.gmra.mxu1 %v365_v52 }
  0xc4   : > { %v354_v56 = vpop.f32.mrf.mxu0 }
  0xc5   : > { %v355_v57 = vadd.f32 %v1042_v26, %v354_v56 }
  0xc7   : > { %v366_v59 = vmax.f32 %v355_v57, 0.0 }
  0xc9   : > { %422 = vmatmul.f32.vlgmr.msra.gmra.mxu3 %v366_v59 }
  0xcc   : > { %v357_v61 = vpop.f32.mrf.mxu0 }
  0xcd   : > { %v358_v62 = vadd.f32 %v1042_v26, %v357_v61 }
  0xcf   : > { %v367_v63 = vmax.f32 %v358_v62, 0.0 }
  0xd1   : > { %425 = vmatmul.f32.gmra.mxu3 %v367_v63 }
 0x116   : > { %v405_v4 = vpop.f32.mrf.mxu1 }
 0x117   : > { %v406_v5 = vadd.f32 %v775_v3, %v405_v4 }
 0x119   : > { %v429_v6 = vmax.f32 %v406_v5, 0.0 }
 0x11b   : > { %473 = vmatmul.f32.vlgmr.msra.gmra.mxu2 %v429_v6 }
 0x11e   : > { %v408_v7 = vpop.f32.mrf.mxu1 }
 0x11f   : > { %v409_v8 = vadd.f32 %v775_v3, %v408_v7 }
 0x121   : > { %v430_v9 = vmax.f32 %v409_v8, 0.0 }
 0x123   : > { %476 = vmatmul.f32.gmra.mxu2 %v430_v9 }
 0x126   : > { %v411_v10 = vpop.f32.mrf.mxu1 }
 0x127   : > { %v412_v11 = vadd.f32 %v775_v3, %v411_v10 }
 0x129   : > { %v431_v12 = vmax.f32 %v412_v11, 0.0 }
 0x12b   : > { %479 = vmatmul.f32.gmra.mxu2 %v431_v12 }
 0x12e   : > { %v414_v13 = vpop.f32.mrf.mxu1 }
 0x12f   : > { %v415_v14 = vadd.f32 %v775_v3, %v414_v13 }
 0x131   : > { %v432_v15 = vmax.f32 %v415_v14, 0.0 }
 0x133   : > { %482 = vmatmul.f32.gmra.mxu2 %v432_v15 }
 0x136   : > { %v417_v16 = vpop.f32.mrf.mxu1 }
 0x137   : > { %v418_v17 = vadd.f32 %v775_v3, %v417_v16 }
 0x139   : > { %v433_v18 = vmax.f32 %v418_v17, 0.0 }
 0x13b   : > { %485 = vmatmul.f32.gmra.mxu2 %v433_v18 }
 0x13e   : > { %v420_v19 = vpop.f32.mrf.mxu1 }
 0x13f   : > { %v421_v20 = vadd.f32 %v775_v3, %v420_v19 }
 0x141   : > { %v434_v21 = vmax.f32 %v421_v20, 0.0 }
 0x143   : > { %488 = vmatmul.f32.gmra.mxu2 %v434_v21 }
 0x14c   : > { %v423_v22 = vpop.f32.mrf.mxu3 }
 0x14d   : > { %v424_v23 = vadd.f32 %v775_v3, %v423_v22 }
 0x14f   : > { %v435_v24 = vmax.f32 %v424_v23, 0.0 }
 0x151   : > { %491 = vmatmul.f32.vlgmr.msrb.gmra.mxu3 %v435_v24 }
 0x154   : > { %v426_v25 = vpop.f32.mrf.mxu3 }
 0x155   : > { %v427_v26 = vadd.f32 %v775_v3, %v426_v25 }
 0x157   : > { %v436_v27 = vmax.f32 %v427_v26, 0.0 }
 0x159   : > { %494 = vmatmul.f32.gmra.mxu3 %v436_v27 }
 0x19e   : > { %v474_v29 = vpop.f32.mrf.mxu2 }
 0x19f   : > { %v475_v30 = vadd.f32 %v776_v28, %v474_v29 }
 0x1a1   : > { %498 = vmax.xlane.f32.xlu0 %v475_v30 }
 0x1a6   : > { %v477_v31 = vpop.f32.mrf.mxu2 }
 0x1a7   : > { %v478_v32 = vadd.f32 %v776_v28, %v477_v31 }
 0x1a9   : > { %500 = vmax.xlane.f32.xlu0 %v478_v32 }
 0x1ae   : > { %v480_v33 = vpop.f32.mrf.mxu2 }
 0x1af   : > { %v481_v34 = vadd.f32 %v776_v28, %v480_v33 }
 0x1b1   : > { %502 = vmax.xlane.f32.xlu1 %v481_v34 }
 0x1b6   : > { %v483_v35 = vpop.f32.mrf.mxu2 }
 0x1b7   : > { %v484_v36 = vadd.f32 %v776_v28, %v483_v35 }
 0x1b9   : > { %504 = vmax.xlane.f32.xlu1 %v484_v36 }
 0x1be   : > { %v486_v37 = vpop.f32.mrf.mxu2 }
 0x1bf   : > { %v487_v38 = vadd.f32 %v776_v28, %v486_v37 }
 0x1c1   : > { %506 = vmax.xlane.f32.xlu2 %v487_v38 }
 0x1c6   : > { %v489_v39 = vpop.f32.mrf.mxu2 }
 0x1c7   : > { %v490_v40 = vadd.f32 %v776_v28, %v489_v39 }
 0x1c9   : > { %508 = vmax.xlane.f32.xlu2 %v490_v40 }
 0x1d4   : > { %v492_v41 = vpop.f32.mrf.mxu3 }
 0x1d5   : > { %v493_v42 = vadd.f32 %v776_v28, %v492_v41 }
 0x1d7   : > { %510 = vmax.xlane.f32.xlu0 %v493_v42 }
 0x1dc   : > { %v495_v43 = vpop.f32.mrf.mxu3 }
 0x1dd   : > { %v496_v44 = vadd.f32 %v776_v28, %v495_v43 }
 0x1df   : > { %512 = vmax.xlane.f32.xlu1 %v496_v44 }
 0x214   : > { %v499_v45 = vpop.xlane.xlu0 %498 }
 0x215   : > { %v514_v46 = vsub.f32 %v475_v30, %v499_v45 }
 0x217   : > { %v522_v47 = vmul.f32 1.442695, %v514_v46 }
 0x219   : > { %777 = vpow2.f32 %v522_v47 }
 0x21c   : > { %v501_v48 = vpop.xlane.xlu0 %500 }
 0x21d   : > { %v515_v49 = vsub.f32 %v478_v32, %v501_v48 }
 0x21f   : > { %v778_v50 = vpop.eup %777  ;;  %v524_v51 = vmul.f32 1.442695, %v515_v49 }
 0x220   : > { %538 = vadd.xlane.f32.xlu2 %v778_v50 }
 0x221   : > { %779 = vpow2.f32 %v524_v51 }
 0x224   : > { %v503_v52 = vpop.xlane.xlu1 %502 }
 0x225   : > { %v516_v53 = vsub.f32 %v481_v34, %v503_v52 }
 0x227   : > { %v780_v54 = vpop.eup %779  ;;  %v526_v55 = vmul.f32 1.442695, %v516_v53 }
 0x228   : > { %540 = vadd.xlane.f32.xlu0 %v780_v54 }
 0x229   : > { %781 = vpow2.f32 %v526_v55 }
 0x22c   : > { %v505_v56 = vpop.xlane.xlu1 %504 }
 0x22d   : > { %v517_v57 = vsub.f32 %v484_v36, %v505_v56 }
 0x22f   : > { %v782_v58 = vpop.eup %781  ;;  %v528_v59 = vmul.f32 1.442695, %v517_v57 }
 0x230   : > { %542 = vadd.xlane.f32.xlu1 %v782_v58 }
 0x231   : > { %783 = vpow2.f32 %v528_v59 }
 0x234   : > { %v507_v60 = vpop.xlane.xlu2 %506 }
 0x235   : > { %v518_v61 = vsub.f32 %v487_v38, %v507_v60 }
 0x237   : > { %v784_v62 = vpop.eup %783  ;;  %v530_v63 = vmul.f32 1.442695, %v518_v61 }
 0x238   : > { %544 = vadd.xlane.f32.xlu2 %v784_v62 }
 0x239   : > { %785 = vpow2.f32 %v530_v63 }
 0x23c   : > { %v509_v0 = vpop.xlane.xlu2 %508 }
 0x23d   : > { %v519_v1 = vsub.f32 %v490_v40, %v509_v0 }
 0x23f   : > { %v786_v2 = vpop.eup %785  ;;  %v532_v3 = vmul.f32 1.442695, %v519_v1 }
 0x240   : > { %546 = vadd.xlane.f32.xlu0 %v786_v2 }
 0x241   : > { %787 = vpow2.f32 %v532_v3 }
 0x247   : > { %v1106_v4 = vpop.eup %787 }
 0x248   : > { %548 = vadd.xlane.f32.xlu1 %v1106_v4 }
 0x24a   : > { %v511_v5 = vpop.xlane.xlu0 %510 }
 0x24b   : > { %v520_v6 = vsub.f32 %v493_v42, %v511_v5 }
 0x24d   : > { %v534_v7 = vmul.f32 1.442695, %v520_v6 }
 0x24f   : > { %789 = vpow2.f32 %v534_v7 }
 0x252   : > { %v513_v8 = vpop.xlane.xlu1 %512 }
 0x253   : > { %v521_v9 = vsub.f32 %v496_v44, %v513_v8 }
 0x255   : > { %v1109_v10 = vpop.eup %789  ;;  %v536_v11 = vmul.f32 1.442695, %v521_v9 }
 0x256   : > { %550 = vadd.xlane.f32.xlu2 %v1109_v10 }
 0x257   : > { %791 = vpow2.f32 %v536_v11 }
 0x25d   : > { %v1112_v12 = vpop.eup %791 }
 0x25e   : > { %552 = vadd.xlane.f32.xlu0 %v1112_v12 }
 0x293   : > { %v539_v13 = vpop.xlane.xlu2 %538 }
 0x294   : > { %793 = vrcp.f32 %v539_v13 }
 0x29a   : > { %v794_v14 = vpop.eup %793 }
 0x29b   : > { %v562_v15 = vmul.f32 %v794_v14, %v539_v13  ;;  %v541_v16 = vpop.xlane.xlu0 %540 }
 0x29c   : > { %795 = vrcp.f32 %v541_v16 }
 0x29d   : > { %v570_v17 = vsub.f32 2.0, %v562_v15 }
 0x29f   : > { %v578_v18 = vmul.f32 %v794_v14, %v570_v17 }
 0x2a1   : > { %v586_v19 = vmul.f32 %v778_v50, %v578_v18 }
 0x2a2   : > { %v796_v20 = vpop.eup %795 }
 0x2a3   : > { %594 = vst [vmem:[%s1118_s9] sm:$0xff] %v586_v19  ;;  %v563_v21 = vmul.f32 %v796_v20, %v541_v16  ;;  %v543_v22 = vpop.xlane.xlu1 %542 }
 0x2a4   : > { %797 = vrcp.f32 %v543_v22 }
 0x2a5   : > { %v571_v23 = vsub.f32 2.0, %v563_v21 }
 0x2a7   : > { %v579_v24 = vmul.f32 %v796_v20, %v571_v23 }
 0x2a9   : > { %v587_v25 = vmul.f32 %v780_v54, %v579_v24 }
 0x2aa   : > { %v798_v26 = vpop.eup %797 }
 0x2ab   : > { %595 = vst [vmem:[%s1118_s9 + $0x8] sm:$0xff] %v587_v25  ;;  %v564_v27 = vmul.f32 %v798_v26, %v543_v22  ;;  %v545_v28 = vpop.xlane.xlu2 %544 }
 0x2ac   : > { %799 = vrcp.f32 %v545_v28 }
 0x2ad   : > { %v572_v29 = vsub.f32 2.0, %v564_v27 }
 0x2af   : > { %v580_v30 = vmul.f32 %v798_v26, %v572_v29 }
 0x2b1   : > { %v588_v31 = vmul.f32 %v782_v58, %v580_v30 }
 0x2b2   : > { %v800_v32 = vpop.eup %799 }
 0x2b3   : > { %596 = vst [vmem:[%s1118_s9 + $0x10] sm:$0xff] %v588_v31  ;;  %v565_v33 = vmul.f32 %v800_v32, %v545_v28  ;;  %v547_v34 = vpop.xlane.xlu0 %546 }
 0x2b4   : > { %801 = vrcp.f32 %v547_v34 }
 0x2b5   : > { %v573_v35 = vsub.f32 2.0, %v565_v33 }
 0x2b7   : > { %v581_v36 = vmul.f32 %v800_v32, %v573_v35 }
 0x2b9   : > { %v589_v37 = vmul.f32 %v784_v62, %v581_v36 }
 0x2ba   : > { %v802_v38 = vpop.eup %801 }
 0x2bb   : > { %597 = vst [vmem:[%s1118_s9 + $0x18] sm:$0xff] %v589_v37  ;;  %v566_v39 = vmul.f32 %v802_v38, %v547_v34  ;;  %v549_v40 = vpop.xlane.xlu1 %548 }
 0x2bc   : > { %803 = vrcp.f32 %v549_v40 }
 0x2bd   : > { %v574_v41 = vsub.f32 2.0, %v566_v39 }
 0x2bf   : > { %v582_v42 = vmul.f32 %v802_v38, %v574_v41 }
 0x2c1   : > { %v590_v43 = vmul.f32 %v786_v2, %v582_v42 }
 0x2c2   : > { %v804_v44 = vpop.eup %803 }
 0x2c3   : > { %598 = vst [vmem:[%s1118_s9 + $0x20] sm:$0xff] %v590_v43  ;;  %v567_v45 = vmul.f32 %v804_v44, %v549_v40 }
 0x2c5   : > { %v575_v46 = vsub.f32 2.0, %v567_v45 }
 0x2c7   : > { %v583_v47 = vmul.f32 %v804_v44, %v575_v46 }
 0x2c9   : > { %v591_v48 = vmul.f32 %v1106_v4, %v583_v47  ;;  %v551_v49 = vpop.xlane.xlu2 %550 }
 0x2ca   : > { %805 = vrcp.f32 %v551_v49 }
 0x2cb   : > { %599 = vst [vmem:[%s1118_s9 + $0x28] sm:$0xff] %v591_v48 }
 0x2d0   : > { %v806_v50 = vpop.eup %805 }
 0x2d1   : > { %v568_v51 = vmul.f32 %v806_v50, %v551_v49  ;;  %v553_v52 = vpop.xlane.xlu0 %552 }
 0x2d2   : > { %807 = vrcp.f32 %v553_v52 }
 0x2d3   : > { %v576_v53 = vsub.f32 2.0, %v568_v51 }
 0x2d5   : > { %v584_v54 = vmul.f32 %v806_v50, %v576_v53 }
 0x2d7   : > { %v592_v55 = vmul.f32 %v1109_v10, %v584_v54 }
 0x2d8   : > { %v808_v56 = vpop.eup %807 }
 0x2d9   : > { %600 = vst [vmem:[%s1118_s9 + $0x30] sm:$0xff] %v592_v55  ;;  %v569_v57 = vmul.f32 %v808_v56, %v553_v52 }
 0x2db   : > { %v577_v58 = vsub.f32 2.0, %v569_v57 }
 0x2dd   : > { %v585_v59 = vmul.f32 %v808_v56, %v577_v58 }
 0x2df   : > { %v593_v60 = vmul.f32 %v1112_v12, %v585_v59 }
 0x2e1   : > { %601 = vst [vmem:[%s1118_s9 + $0x38] sm:$0xff] %v593_v60 }
 0x2e2   : > { %836 = shalt.err (!%p833_p3)
}
 0x2e3   : > { %s873_s29 = smov 128   ;;  %s874_s9 = smov 8  }
 0x2e4   : > { %733 = dma.vmem_to_hbm [thread:$0]  (%p953_p5), %s616_s16, 1024, %s618_s17, %s603_s28, %s873_s29, %s873_s29, %s874_s9  }
 0x2e5 PF: > { %p739_p4 = scmp.ge.s32.totalorder %s871_s27, 2  ;;  %s632_s21 = sand.u32 1, %s859_s24  }
 0x2e6   : > { %s633_s14 = scalar_lea.sflag [#allocation3], %s632_s21 }
 0x2e7   : > { %p736_p7 = pnand %p739_p4, %p957_p6 }
 0x2e9   : > { %p737_p8 = pneg %p736_p7 }
 0x2eb   : > { %854 = dma.done.wait (%p737_p8), %s633_s14, 1024  }
 0x2ec   : > { %856 = vsyncadd (%p737_p8), %s633_s14, 4294966272  ;;  %p17_p9 = scmp.ge.s32.totalorder %s940_s30, 6   ;;  %s1175_s24 = smov %s863_s25 }
 0x2ed   : > { %s1176_s25 = smov %s867_s26  ;;  %s1177_s26 = smov %s951_s10 }
 0x2ee   : > { %s1178_s27 = smov %s940_s30  ;;  %19 = sbr.rel (!%p17_p9) target bundleno = 3 (0x3), region = 83 }
 0x2f3   :  { %639 = vsyncpa [#allocation3], 1 }
 0x2f4   :  { %641 = vsyncpa [#allocation3 + $0x1], 1 }

</bundles_post_ra>
